<compile_context>
chip_gen: v7x
topology: tpu7x:2x2x1
jax: 0.10.0
libtpu: 0.0.40
codegen_flags: <defaults>
</compile_context>

<pallas_src>
import math
from functools import partial

import numpy as np
import jax
import jax.numpy as jnp
from jax import lax
from jax.experimental import pallas as pl
from jax.experimental.pallas import tpu as pltpu


# ----------------------------------------------------------------------------
# Kernel 1: linear projection + L2-norm cosine prob + sinkhorn(prob_temp)
#           + per-core batch-sum of raw prob (VMEM-resident accumulator)
# ----------------------------------------------------------------------------
def _emb_prob_kernel(x_ref, w_ref, b_ref, cn_ref,
                     xemb_ref, probt_ref, psum_ref, *,
                     epsilon, bt, n_vars, bs, nb_arb):
    c = pl.program_id(0)                      # core ("parallel") axis
    b = pl.program_id(1)                      # batch-block ("arbitrary") axis
    row0 = (c * nb_arb + b) * bt              # first (padded) global batch row of this block

    x = x_ref[...]                            # (bt, n_vars, seq_len) -- seq_len lane-dense
    seq_len = x.shape[-1]
    d_model = w_ref.shape[-1]
    n_cluster = cn_ref.shape[0]

    # One (bt*n_vars, seq_len) @ (seq_len, d_model) MXU pass per grid step.
    x_rows = x.reshape(bt * n_vars, seq_len)
    x_emb = jnp.dot(x_rows, w_ref[...], preferred_element_type=jnp.float32) + b_ref[...]

    # validity of each batch row (zero-padded tail / padded core blocks)
    valid3 = (row0 + lax.broadcasted_iota(jnp.int32, (bt, 1, 1), 0) < bs
              ).astype(jnp.float32)                               # (bt, 1, 1)

    # bf16 storage halves the x_emb HBM round trip to kernel 2; padded rows zeroed so
    # they contribute nothing to the attention accumulation.
    x_emb3 = x_emb.reshape(bt, n_vars, d_model)
    xemb_ref[...] = (x_emb3 * valid3).astype(jnp.bfloat16)

    # F.normalize(dim=1) over d_model (rsqrt -> EUP slot)
    inv_norm = lax.rsqrt(
        jnp.maximum(jnp.sum(x_emb * x_emb, axis=1, keepdims=True), 1e-24))
    xn = x_emb * inv_norm
    # prob = l2norm(x_emb) @ l2norm(cluster_emb)^T  (contracted dims, no explicit .T)
    prob = lax.dot_general(xn, cn_ref[...], (((1,), (1,)), ((), ())),
                           preferred_element_type=jnp.float32)    # (bt*n_vars, n_cluster)

    # sinkhorn(prob_temp): exp(prob/eps) row-normalized.  User-visible -> exact divide.
    q = jnp.exp(prob * (1.0 / epsilon))
    probt = q / jnp.sum(q, axis=1, keepdims=True)
    prob3 = prob.reshape(bt, n_vars, n_cluster)
    probt_ref[...] = probt.reshape(bt, n_vars, n_cluster)

    # batch-sum of raw prob, accumulated in this core's resident VMEM block
    @pl.when(b == 0)
    def _():
        psum_ref[...] = jnp.zeros_like(psum_ref)

    psum_ref[...] += jnp.sum(prob3 * valid3, axis=0)[None]


# ----------------------------------------------------------------------------
# Kernel 2: masked single-head cross attention, batch-summed into a per-core
#           resident VMEM block (two large MXU matmuls per grid step)
# ----------------------------------------------------------------------------
def _attn_kernel(q_ref, kv_ref, mask_ref, out_ref, *, scale, bt, n_vars):
    b = pl.program_id(1)

    @pl.when(b == 0)
    def _():
        out_ref[...] = jnp.zeros_like(out_ref)

    d_model = kv_ref.shape[-1]
    n_cluster = q_ref.shape[0]

    kv = kv_ref[...]                                        # (bt, n_vars, d_model) bf16
    kv_flat = kv.reshape(bt * n_vars, d_model)
    qb = q_ref[...].astype(jnp.bfloat16)                    # (n_cluster, d_model)

    # all scores in one MXU pass: (bt*n_vars, d) x (n_cluster, d) -> (bt*n_vars, n_cluster)
    s = lax.dot_general(kv_flat, qb, (((1,), (1,)), ((), ())),
                        preferred_element_type=jnp.float32) * scale
    s = s.reshape(bt, n_vars, n_cluster)

    # softmax over the key axis (n_vars); approx reciprocal -> EUP slot (internal only)
    m = jnp.max(s, axis=1, keepdims=True)
    e = jnp.exp(s - m)
    a = e * pl.reciprocal(jnp.sum(e, axis=1, keepdims=True), approx=True)
    # TODO(synk): attention_dropout(p=0.1) is eval-mode identity here.
    a = a * mask_ref[...][None, :, :]                       # (n_vars, n_cluster), no transpose

    # single (n_cluster, bt*n_vars) x (bt*n_vars, d_model) accumulation matmul
    # (padded batches have kv == 0, so they contribute nothing)
    a_flat = a.reshape(bt * n_vars, n_cluster).astype(jnp.bfloat16)
    out_ref[...] += lax.dot_general(a_flat, kv_flat, (((0,), (0,)), ((), ())),
                                    preferred_element_type=jnp.float32)[None]


# ----------------------------------------------------------------------------
# Wrapper
# ----------------------------------------------------------------------------
def _pick_batch_tile(bs, n_vars, seq_len, d_model, n_cluster, max_tile, vmem_budget_bytes):
    """Largest batch tile <= max_tile and <= bs that fits a rough VMEM budget."""
    lane = 128
    per_row = n_vars * (seq_len * 4                 # x block (f32, seq_len lane-dense)
                        + d_model * 4               # in-kernel f32 x_emb
                        + d_model * 2 * 2           # bf16 x_emb write + kernel-2 kv buffers
                        + max(n_cluster, lane) * 4)  # prob / prob_temp lane padding
    cap = max(1, int(vmem_budget_bytes // (3 * per_row)))
    return max(1, min(bs, max_tile, cap))


def cluster_assigner_forward(x, cluster_emb, w_t, bias, noise_key,
                             epsilon=0.05, temp=0.07,
                             batch_tile=32, num_cores=1,
                             vmem_limit_bytes=48 * 1024 * 1024):
    """
    x:           (bs, seq_len, n_vars)   float32 (PyTorch input layout)
    cluster_emb: (n_cluster, d_model)    float32
    w_t:         (seq_len, d_model)      nn.Linear weight, transposed
    bias:        (d_model,)              nn.Linear bias
    num_cores:   set 2 on v7x to split the batch over both TensorCores (per-core
                 partial accumulators are combined below); 1 on v5e/v6e.
    Returns (prob_temp (bs, n_vars, n_cluster), cluster_emb_avg (n_cluster, d_model)).
    """
    bs, seq_len, n_vars = x.shape
    n_cluster, d_model = cluster_emb.shape

    bt = _pick_batch_tile(bs, n_vars, seq_len, d_model, n_cluster,
                          batch_tile, vmem_limit_bytes)
    nb = pl.cdiv(bs, bt)
    nb_arb = pl.cdiv(nb, num_cores)          # grid steps per core along the "arbitrary" axis
    bs_pad = int(num_cores * nb_arb * bt)

    # lane-dense layout: seq_len on the minor axis (mirrors x.permute(0, 2, 1) in torch);
    # zero-pad the batch so every (core, step) block is full -- padded rows masked in-kernel.
    xp = jnp.transpose(x, (0, 2, 1))
    if bs_pad != bs:
        xp = jnp.pad(xp, ((0, bs_pad - bs), (0, 0), (0, 0)))

    bias2d = bias.reshape(1, d_model)
    # cluster-embedding L2 norm hoisted out of the per-batch loop
    cn = cluster_emb * lax.rsqrt(
        jnp.maximum(jnp.sum(cluster_emb * cluster_emb, axis=1, keepdims=True), 1e-24))

    cparams = pltpu.CompilerParams(
        dimension_semantics=("parallel", "arbitrary"),
        vmem_limit_bytes=vmem_limit_bytes)

    blk_idx = lambda c, b: (c * nb_arb + b, 0, 0)

    # ---- kernel 1: projection + prob_temp + per-core batch-sum of prob ----
    kern1 = partial(_emb_prob_kernel, epsilon=epsilon, bt=bt, n_vars=n_vars,
                    bs=bs, nb_arb=nb_arb)
    x_emb, prob_temp_pad, psum_parts = pl.pallas_call(
        kern1,
        grid=(num_cores, nb_arb),
        in_specs=[
            pl.BlockSpec((bt, n_vars, seq_len), blk_idx),
            pl.BlockSpec((seq_len, d_model), lambda c, b: (0, 0)),
            pl.BlockSpec((1, d_model), lambda c, b: (0, 0)),
            pl.BlockSpec((n_cluster, d_model), lambda c, b: (0, 0)),
        ],
        out_specs=[
            pl.BlockSpec((bt, n_vars, d_model), blk_idx),
            pl.BlockSpec((bt, n_vars, n_cluster), blk_idx),
            pl.BlockSpec((1, n_vars, n_cluster), lambda c, b: (c, 0, 0)),  # per-core resident
        ],
        out_shape=[
            jax.ShapeDtypeStruct((bs_pad, n_vars, d_model), jnp.bfloat16),
            jax.ShapeDtypeStruct((bs_pad, n_vars, n_cluster), jnp.float32),
            jax.ShapeDtypeStruct((num_cores, n_vars, n_cluster), jnp.float32),
        ],
        compiler_params=cparams,
    )(xp, w_t, bias2d, cn)

    prob_temp = prob_temp_pad[:bs]

    # ---- tiny glue in plain JAX (exact math on an (n_vars, n_cluster) tensor):
    # prob_avg -> sinkhorn -> concrete-Bernoulli mask.  Kept outside the kernels so the
    # per-core psum partials can be combined and the mask never lives in an uninitialized
    # cross-core scratch (read-before-write hazard with the "parallel" core axis).
    prob_avg = jnp.sum(psum_parts, axis=0) * (1.0 / bs)
    qa = jnp.exp(prob_avg * (1.0 / epsilon))
    prob_avg = qa / jnp.sum(qa, axis=1, keepdims=True)
    u = jax.random.uniform(noise_key, (n_vars, n_cluster),
                           minval=1e-10, maxval=1.0 - 1e-10, dtype=jnp.float32)
    noise = jnp.log(u) - jnp.log(1.0 - u)
    logit = jnp.log(prob_avg + 1e-10) - jnp.log(1.0 - prob_avg + 1e-10)
    mask = jax.nn.sigmoid((logit + noise) * (1.0 / temp))          # (n_vars, n_cluster)

    # ---- kernel 2: batched masked cross attention, batch mean accumulated in VMEM ----
    kv_kwargs = {}
    if hasattr(pl, "Buffered"):               # deeper kv pipelining (tiny compute per block)
        kv_kwargs["pipeline_mode"] = pl.Buffered(3)
    try:
        kv_spec = pl.BlockSpec((bt, n_vars, d_model), blk_idx, **kv_kwargs)
    except TypeError:                         # older BlockSpec without pipeline_mode
        kv_spec = pl.BlockSpec((bt, n_vars, d_model), blk_idx)

    scale = 1.0 / math.sqrt(d_model)
    kern2 = partial(_attn_kernel, scale=scale, bt=bt, n_vars=n_vars)
    out_parts = pl.pallas_call(
        kern2,
        grid=(num_cores, nb_arb),
        in_specs=[
            pl.BlockSpec((n_cluster, d_model), lambda c, b: (0, 0)),
            kv_spec,
            pl.BlockSpec((n_vars, n_cluster), lambda c, b: (0, 0)),
        ],
        out_specs=pl.BlockSpec((1, n_cluster, d_model), lambda c, b: (c, 0, 0)),
        out_shape=jax.ShapeDtypeStruct((num_cores, n_cluster, d_model), jnp.float32),
        compiler_params=cparams,
    )(cluster_emb, x_emb, mask)

    cluster_emb_avg = jnp.sum(out_parts, axis=0) * (1.0 / bs)
    return prob_temp, cluster_emb_avg


# ----------------------------------------------------------------------------
# Pure-JAX reference of the PyTorch forward (eval-mode dropout), for parity checks
# ----------------------------------------------------------------------------
def reference_forward(x, cluster_emb, w_t, bias, noise_key, epsilon=0.05, temp=0.07):
    bs, seq_len, n_vars = x.shape
    n_cluster, d_model = cluster_emb.shape
    hi = jax.lax.Precision.HIGHEST

    def l2norm(a):
        return a / jnp.sqrt(jnp.maximum(jnp.sum(a * a, axis=1, keepdims=True), 1e-24))

    def sinkhorn(o):
        q = jnp.exp(o / epsilon)
        return q / jnp.sum(q, axis=1, keepdims=True)

    xp = jnp.transpose(x, (0, 2, 1)).reshape(bs * n_vars, seq_len)
    x_emb = jnp.dot(xp, w_t, precision=hi) + bias
    prob = jnp.dot(l2norm(x_emb), l2norm(cluster_emb).T, precision=hi)
    prob = prob.reshape(bs, n_vars, n_cluster)
    prob_temp = sinkhorn(prob.reshape(-1, n_cluster)).reshape(bs, n_vars, n_cluster)
    prob_avg = sinkhorn(jnp.mean(prob, axis=0))
    u = jax.random.uniform(noise_key, (n_vars, n_cluster),
                           minval=1e-10, maxval=1.0 - 1e-10, dtype=jnp.float32)
    noise = jnp.log(u) - jnp.log(1.0 - u)
    logit = jnp.log(prob_avg + 1e-10) - jnp.log(1.0 - prob_avg + 1e-10)
    mask = jax.nn.sigmoid((logit + noise) / temp)                   # (n_vars, n_cluster)

    x_emb3 = x_emb.reshape(bs, n_vars, d_model)
    scores = jnp.einsum('ld,bsd->bls', cluster_emb, x_emb3,
                        precision=hi) / math.sqrt(d_model)
    attn = jax.nn.softmax(scores, axis=-1) * mask.T[None]
    v = jnp.einsum('bls,bsd->bld', attn, x_emb3, precision=hi)
    return prob_temp, jnp.mean(v, axis=0)


def _check(pt, cea, ref_pt, ref_cea, bs, n_vars, n_cluster, d_model):
    assert pt.shape == (bs, n_vars, n_cluster)
    assert cea.shape == (n_cluster, d_model)
    assert bool(jnp.all(jnp.isfinite(pt))) and bool(jnp.all(jnp.isfinite(cea)))
    # exact-division sinkhorn rows sum to 1
    np.testing.assert_allclose(np.asarray(jnp.sum(pt, axis=-1)), 1.0, atol=1e-3)
    # loose tolerances cover bf16 x_emb storage, approx-reciprocal attention softmax and
    # MXU-vs-XLA matmul precision differences amplified by exp(./eps) / sigmoid(./temp)
    np.testing.assert_allclose(np.asarray(pt), np.asarray(ref_pt), rtol=2e-1, atol=5e-2)
    np.testing.assert_allclose(np.asarray(cea), np.asarray(ref_cea), rtol=3e-1, atol=1e-1)


# ----------------------------------------------------------------------------
if __name__ == "__main__":
    seq_len, n_vars = 16, 8
    d_model, n_cluster = 32, 4

    key = jax.random.PRNGKey(0)
    kx1, kx2, kc, kw, kb, kn = jax.random.split(key, 6)

    # deterministic parameter init (kaiming-uniform-ish bounds)
    bound_c = math.sqrt(6.0 / d_model)
    cluster_emb = jax.random.uniform(kc, (n_cluster, d_model),
                                     minval=-bound_c, maxval=bound_c, dtype=jnp.float32)
    bound_w = 1.0 / math.sqrt(seq_len)
    w_t = jax.random.uniform(kw, (seq_len, d_model),
                             minval=-bound_w, maxval=bound_w, dtype=jnp.float32)
    bias = jax.random.uniform(kb, (d_model,),
                              minval=-bound_w, maxval=bound_w, dtype=jnp.float32)

    # config 1: bs=2, single grid step, no padding
    bs1 = 2
    x1 = jax.random.normal(kx1, (bs1, seq_len, n_vars), dtype=jnp.float32)
    pt1, cea1 = cluster_assigner_forward(x1, cluster_emb, w_t, bias, kn)
    rpt1, rcea1 = reference_forward(x1, cluster_emb, w_t, bias, kn)
    jax.block_until_ready((pt1, cea1, rpt1, rcea1))
    _check(pt1, cea1, rpt1, rcea1, bs1, n_vars, n_cluster, d_model)

    # config 2: bs=5, batch_tile=2, num_cores=2 -> exercises the cdiv grid, the
    # zero-padded/masked tail and the per-core partial accumulators (v7x path)
    bs2 = 5
    x2 = jax.random.normal(kx2, (bs2, seq_len, n_vars), dtype=jnp.float32)
    pt2, cea2 = cluster_assigner_forward(x2, cluster_emb, w_t, bias, kn,
                                         batch_tile=2, num_cores=2)
    rpt2, rcea2 = reference_forward(x2, cluster_emb, w_t, bias, kn)
    jax.block_until_ready((pt2, cea2, rpt2, rcea2))
    _check(pt2, cea2, rpt2, rcea2, bs2, n_vars, n_cluster, d_model)

    print("KERNEL_OK")
</pallas_src>

<mosaic_0001>
module attributes {stable_mosaic.version = 11 : i64} {
  func.func @_emb_prob_kernel(%arg0: i32, %arg1: i32, %arg2: memref<2x8x16xf32, #tpu.memory_space<vmem>>, %arg3: memref<16x32xf32, #tpu.memory_space<vmem>>, %arg4: memref<1x32xf32, #tpu.memory_space<vmem>>, %arg5: memref<4x32xf32, #tpu.memory_space<vmem>>, %arg6: memref<2x8x32xbf16, #tpu.memory_space<vmem>>, %arg7: memref<2x8x4xf32, #tpu.memory_space<vmem>>, %arg8: memref<1x8x4xf32, #tpu.memory_space<vmem>>) attributes {dimension_semantics = [#tpu.dimension_semantics<parallel>, #tpu.dimension_semantics<arbitrary>], iteration_bounds = array<i64: 1, 1>, scalar_prefetch = 0 : i64, scratch_operands = 0 : i64, tpu.core_type = #tpu.core_type<tc>, window_params = [{transform_indices = @transform_0, window_bounds = array<i64: 2, 8, 16>}, {pipeline_mode = #tpu.pipeline_mode<synchronous>, transform_indices = @transform_1, window_bounds = array<i64: 16, 32>}, {pipeline_mode = #tpu.pipeline_mode<synchronous>, transform_indices = @transform_2, window_bounds = array<i64: 1, 32>}, {pipeline_mode = #tpu.pipeline_mode<synchronous>, transform_indices = @transform_3, window_bounds = array<i64: 4, 32>}, {transform_indices = @transform_4, window_bounds = array<i64: 2, 8, 32>}, {transform_indices = @transform_5, window_bounds = array<i64: 2, 8, 4>}, {transform_indices = @transform_6, window_bounds = array<i64: 1, 8, 4>}]} {
    %c1_i32 = arith.constant 1 : i32
    %0 = arith.muli %arg0, %c1_i32 : i32
    %1 = arith.addi %0, %arg1 : i32
    %c2_i32 = arith.constant 2 : i32
    %2 = arith.muli %1, %c2_i32 : i32
    %c0 = arith.constant 0 : index
    %c0_0 = arith.constant 0 : index
    %c0_1 = arith.constant 0 : index
    %3 = vector.load %arg2[%c0, %c0_0, %c0_1] : memref<2x8x16xf32, #tpu.memory_space<vmem>>, vector<2x8x16xf32>
    %4 = vector.shape_cast %3 : vector<2x8x16xf32> to vector<16x16xf32>
    %c0_2 = arith.constant 0 : index
    %c0_3 = arith.constant 0 : index
    %5 = vector.load %arg3[%c0_2, %c0_3] : memref<16x32xf32, #tpu.memory_space<vmem>>, vector<16x32xf32>
    %cst = arith.constant dense<0.000000e+00> : vector<16x32xf32>
    %6 = tpu.matmul %4, %5, %cst {dimension_numbers = #tpu.dot_dimension_numbers<[1], [0], [0], [1], [0, 0, 1, 1], [], []>} : vector<16x16xf32>, vector<16x32xf32>, vector<16x32xf32> -> vector<16x32xf32>
    %c0_4 = arith.constant 0 : index
    %c0_5 = arith.constant 0 : index
    %7 = vector.load %arg4[%c0_4, %c0_5] : memref<1x32xf32, #tpu.memory_space<vmem>>, vector<1x32xf32>
    %8 = vector.broadcast %7 : vector<1x32xf32> to vector<16x32xf32>
    %9 = arith.addf %6, %8 : vector<16x32xf32>
    %10 = tpu.iota {dimensions = array<i32: 0>} : vector<2x1x1xi32>
    %11 = vector.broadcast %2 : i32 to vector<2x1x1xi32>
    %12 = arith.addi %11, %10 : vector<2x1x1xi32>
    %c2_i32_6 = arith.constant 2 : i32
    %13 = vector.broadcast %c2_i32_6 : i32 to vector<2x1x1xi32>
    %14 = arith.cmpi slt, %12, %13 : vector<2x1x1xi32>
    %15 = arith.extui %14 : vector<2x1x1xi1> to vector<2x1x1xi32>
    %16 = arith.sitofp %15 : vector<2x1x1xi32> to vector<2x1x1xf32>
    %17 = vector.shape_cast %9 : vector<16x32xf32> to vector<2x8x32xf32>
    %18 = vector.broadcast %16 : vector<2x1x1xf32> to vector<2x8x32xf32>
    %19 = arith.mulf %17, %18 : vector<2x8x32xf32>
    %20 = arith.truncf %19 : vector<2x8x32xf32> to vector<2x8x32xbf16>
    %c0_7 = arith.constant 0 : index
    %c0_8 = arith.constant 0 : index
    %c0_9 = arith.constant 0 : index
    %21 = vector.load %arg6[%c0_7, %c0_8, %c0_9] : memref<2x8x32xbf16, #tpu.memory_space<vmem>>, vector<2x8x32xbf16>
    tpu.vector_store %arg6[%c0_7, %c0_8, %c0_9], %20 {strides = array<i32>} : memref<2x8x32xbf16, #tpu.memory_space<vmem>>, vector<2x8x32xbf16>,
    %22 = arith.mulf %9, %9 : vector<16x32xf32>
    %cst_10 = arith.constant dense<0.000000e+00> : vector<16xf32>
    %23 = vector.multi_reduction <add>, %22, %cst_10 [1] : vector<16x32xf32> to vector<16xf32>
    %24 = vector.shape_cast %23 : vector<16xf32> to vector<16x1xf32>
    %cst_11 = arith.constant 1.000000e-24 : f32
    %25 = vector.broadcast %cst_11 : f32 to vector<16x1xf32>
    %26 = arith.maximumf %24, %25 : vector<16x1xf32>
    %27 = math.rsqrt %26 : vector<16x1xf32>
    %28 = vector.broadcast %27 : vector<16x1xf32> to vector<16x32xf32>
    %29 = arith.mulf %9, %28 : vector<16x32xf32>
    %c0_12 = arith.constant 0 : index
    %c0_13 = arith.constant 0 : index
    %30 = vector.load %arg5[%c0_12, %c0_13] : memref<4x32xf32, #tpu.memory_space<vmem>>, vector<4x32xf32>
    %cst_14 = arith.constant dense<0.000000e+00> : vector<16x4xf32>
    %31 = tpu.matmul %29, %30, %cst_14 {dimension_numbers = #tpu.dot_dimension_numbers<[1], [1], [0], [0], [0, 0, 1, 0], [], []>} : vector<16x32xf32>, vector<4x32xf32>, vector<16x4xf32> -> vector<16x4xf32>
    %cst_15 = arith.constant 2.000000e+01 : f32
    %32 = vector.broadcast %cst_15 : f32 to vector<16x4xf32>
    %33 = arith.mulf %31, %32 : vector<16x4xf32>
    %34 = math.exp %33 : vector<16x4xf32>
    %cst_16 = arith.constant dense<0.000000e+00> : vector<16xf32>
    %35 = vector.multi_reduction <add>, %34, %cst_16 [1] : vector<16x4xf32> to vector<16xf32>
    %36 = vector.shape_cast %35 : vector<16xf32> to vector<16x1xf32>
    %37 = vector.broadcast %36 : vector<16x1xf32> to vector<16x4xf32>
    %38 = arith.divf %34, %37 : vector<16x4xf32>
    %39 = vector.shape_cast %31 : vector<16x4xf32> to vector<2x8x4xf32>
    %40 = vector.shape_cast %38 : vector<16x4xf32> to vector<2x8x4xf32>
    %c0_17 = arith.constant 0 : index
    %c0_18 = arith.constant 0 : index
    %c0_19 = arith.constant 0 : index
    %41 = vector.load %arg7[%c0_17, %c0_18, %c0_19] : memref<2x8x4xf32, #tpu.memory_space<vmem>>, vector<2x8x4xf32>
    tpu.vector_store %arg7[%c0_17, %c0_18, %c0_19], %40 {strides = array<i32>} : memref<2x8x4xf32, #tpu.memory_space<vmem>>, vector<2x8x4xf32>,
    %c0_i32 = arith.constant 0 : i32
    %42 = arith.cmpi eq, %arg1, %c0_i32 : i32
    %43 = arith.extui %42 : i1 to i32
    %c0_i32_20 = arith.constant 0 : i32
    %44 = arith.cmpi ne, %43, %c0_i32_20 : i32
    scf.if %44 {
      %cst_28 = arith.constant 0.000000e+00 : f32
      %52 = vector.broadcast %cst_28 : f32 to vector<1x8x4xf32>
      %c0_29 = arith.constant 0 : index
      %c0_30 = arith.constant 0 : index
      %c0_31 = arith.constant 0 : index
      %53 = vector.load %arg8[%c0_29, %c0_30, %c0_31] : memref<1x8x4xf32, #tpu.memory_space<vmem>>, vector<1x8x4xf32>
      tpu.vector_store %arg8[%c0_29, %c0_30, %c0_31], %52 {strides = array<i32>} : memref<1x8x4xf32, #tpu.memory_space<vmem>>, vector<1x8x4xf32>,
    } else {
    }
    %c0_21 = arith.constant 0 : index
    %c0_22 = arith.constant 0 : index
    %c0_23 = arith.constant 0 : index
    %45 = vector.load %arg8[%c0_21, %c0_22, %c0_23] : memref<1x8x4xf32, #tpu.memory_space<vmem>>, vector<1x8x4xf32>
    %46 = vector.broadcast %16 : vector<2x1x1xf32> to vector<2x8x4xf32>
    %47 = arith.mulf %39, %46 : vector<2x8x4xf32>
    %cst_24 = arith.constant dense<0.000000e+00> : vector<8x4xf32>
    %48 = vector.multi_reduction <add>, %47, %cst_24 [0] : vector<2x8x4xf32> to vector<8x4xf32>
    %49 = vector.shape_cast %48 : vector<8x4xf32> to vector<1x8x4xf32>
    %50 = arith.addf %45, %49 : vector<1x8x4xf32>
    %c0_25 = arith.constant 0 : index
    %c0_26 = arith.constant 0 : index
    %c0_27 = arith.constant 0 : index
    %51 = vector.load %arg8[%c0_25, %c0_26, %c0_27] : memref<1x8x4xf32, #tpu.memory_space<vmem>>, vector<1x8x4xf32>
    tpu.vector_store %arg8[%c0_25, %c0_26, %c0_27], %50 {strides = array<i32>} : memref<1x8x4xf32, #tpu.memory_space<vmem>>, vector<1x8x4xf32>,
    return
  }
  func.func @transform_0(%arg0: i32, %arg1: i32) -> (i32, i32, i32) {
    %c1_i32 = arith.constant 1 : i32
    %0 = arith.muli %arg0, %c1_i32 : i32
    %1 = arith.addi %0, %arg1 : i32
    %c0_i32 = arith.constant 0 : i32
    %c0_i32_0 = arith.constant 0 : i32
    %c0_i32_1 = arith.constant 0 : i32
    return %1, %c0_i32, %c0_i32_0 : i32, i32, i32
  }
  func.func @transform_1(%arg0: i32, %arg1: i32) -> (i32, i32) {
    %c0_i32 = arith.constant 0 : i32
    %c0_i32_0 = arith.constant 0 : i32
    %c0_i32_1 = arith.constant 0 : i32
    return %c0_i32, %c0_i32_0 : i32, i32
  }
  func.func @transform_2(%arg0: i32, %arg1: i32) -> (i32, i32) {
    %c0_i32 = arith.constant 0 : i32
    %c0_i32_0 = arith.constant 0 : i32
    %c0_i32_1 = arith.constant 0 : i32
    return %c0_i32, %c0_i32_0 : i32, i32
  }
  func.func @transform_3(%arg0: i32, %arg1: i32) -> (i32, i32) {
    %c0_i32 = arith.constant 0 : i32
    %c0_i32_0 = arith.constant 0 : i32
    %c0_i32_1 = arith.constant 0 : i32
    return %c0_i32, %c0_i32_0 : i32, i32
  }
  func.func @transform_4(%arg0: i32, %arg1: i32) -> (i32, i32, i32) {
    %c1_i32 = arith.constant 1 : i32
    %0 = arith.muli %arg0, %c1_i32 : i32
    %1 = arith.addi %0, %arg1 : i32
    %c0_i32 = arith.constant 0 : i32
    %c0_i32_0 = arith.constant 0 : i32
    %c0_i32_1 = arith.constant 0 : i32
    return %1, %c0_i32, %c0_i32_0 : i32, i32, i32
  }
  func.func @transform_5(%arg0: i32, %arg1: i32) -> (i32, i32, i32) {
    %c1_i32 = arith.constant 1 : i32
    %0 = arith.muli %arg0, %c1_i32 : i32
    %1 = arith.addi %0, %arg1 : i32
    %c0_i32 = arith.constant 0 : i32
    %c0_i32_0 = arith.constant 0 : i32
    %c0_i32_1 = arith.constant 0 : i32
    return %1, %c0_i32, %c0_i32_0 : i32, i32, i32
  }
  func.func @transform_6(%arg0: i32, %arg1: i32) -> (i32, i32, i32) {
    %c0_i32 = arith.constant 0 : i32
    %c0_i32_0 = arith.constant 0 : i32
    %c0_i32_1 = arith.constant 0 : i32
    return %arg0, %c0_i32, %c0_i32_0 : i32, i32, i32
  }
}

</mosaic_0001>

<bundles_post_ra>
// kernel: tpu_custom_call.1
= control target key start
LH: loop header
LB: loop body
LE: loop exit
PB: predicated region body
PF: predicated region fallthrough
CT: control target
= control target key end

     0   :  { %12 = vsyncpa [#allocation3], 0  ;;  %s600_s0 = inlined_call_operand.hbm [shape: f32[2,8,16], index: 0, kind: input, shape index: {}]   ;;  %s601_s1 = inlined_call_operand.hbm [shape: f32[16,32], index: 1, kind: input, shape index: {}]   ;;  %s602_s2 = inlined_call_operand.vmem [shape: f32[1,32], index: 2, kind: input, shape index: {}]   ;;  %s603_s3 = inlined_call_operand.vmem [shape: f32[4,32], index: 3, kind: input, shape index: {}]   ;;  %s604_s4 = inlined_call_operand.hbm [shape: bf16[2,8,32], index: 4, kind: output, shape index: {0}]   ;;  %s605_s5 = inlined_call_operand.vmem [shape: f32[2,8,4], index: 5, kind: output, shape index: {1}]   ;;  %s606_s6 = inlined_call_operand.vmem [shape: f32[1,8,4], index: 6, kind: output, shape index: {2}]  }
   0x1   :  { %13 = vsyncpa [#allocation6], 0 }
   0x2   :  { %14 = vsyncpa [#allocation4], 0  ;;  %s486_s21 = smov [#allocation2]   ;;  %s414_s25 = scalar_lea.hbm %s600_s0, 256 }
   0x3   :  { %s24_s22 = sshll.u32 %s486_s21, 4  ;;  %p415_p0 = scmp.ne.s32.totalorder %s600_s0, %s414_s25  ;;  %s25_s22 = int_to_ptr.vmem [resolvable:$true] %s24_s22 }
   0x4   :  { %p418_p1 = scmp.lt.u32.totalorder %s414_s25, %s600_s0 }
   0x6   :  { %p420_p2 = pnand %p418_p1, %p415_p0 }
   0x8   :  { %423 = shalt.err (!%p420_p2)
}
   0x9   :  { %s424_s30 = scalar_lea.vmem %s25_s22, 256  ;;  %p429_p4 = scmp.lt.s32.totalorder %s25_s22, %s25_s22 }
   0xa   :  { %p425_p3 = scmp.ne.s32.totalorder %s25_s22, %s424_s30  ;;  %p430_p5 = scmp.lt.s32.totalorder %s424_s30, %s424_s30 }
   0xc   :  { %p431_p6 = por %p430_p5, %p429_p4 }
   0xe   :  { %p432_p7 = pnand %p431_p6, %p425_p3 }
  0x10   :  { %435 = shalt.err (!%p432_p7)
}
  0x11   :  { %s487_s7 = smov 128   ;;  %s488_s8 = smov 8  }
  0x12   :  { %30 = dma.hbm_to_vmem [thread:$0]  %s600_s0, 256, %s25_s22, [#allocation3], %s487_s7, %s487_s7, %s488_s8  }
  0x13   :  { %s489_s11 = smov [#allocation5]   ;;  %s436_s15 = scalar_lea.hbm %s601_s1, 256 }
  0x14   :  { %s36_s12 = sshll.u32 %s489_s11, 4  ;;  %p437_p8 = scmp.ne.s32.totalorder %s601_s1, %s436_s15  ;;  %s37_s12 = int_to_ptr.vmem [resolvable:$true] %s36_s12 }
  0x15   :  { %p440_p9 = scmp.lt.u32.totalorder %s436_s15, %s601_s1 }
  0x17   :  { %p442_p10 = pnand %p440_p9, %p437_p8 }
  0x19   :  { %445 = shalt.err (!%p442_p10)
}
  0x1a   :  { %s446_s20 = scalar_lea.vmem %s37_s12, 256  ;;  %p451_p12 = scmp.lt.s32.totalorder %s37_s12, %s37_s12 }
  0x1b   :  { %p447_p11 = scmp.ne.s32.totalorder %s37_s12, %s446_s20  ;;  %p452_p13 = scmp.lt.s32.totalorder %s446_s20, %s446_s20 }
  0x1d   :  { %p453_p0 = por %p452_p13, %p451_p12 }
  0x1f   :  { %p454_p1 = pnand %p453_p0, %p447_p11 }
  0x21   :  { %457 = shalt.err (!%p454_p1)
}
  0x22   :  { %42 = dma.hbm_to_vmem [thread:$0]  %s601_s1, 256, %s37_s12, [#allocation6], %s487_s7, %s487_s7, %s488_s8  }
  0x23   :  { %480 = dma.done.wait [#allocation3], 256  }
  0x24   :  { %481 = vsyncadd [#allocation3], 4294967040 }
  0x25   :  { %482 = dma.done.wait [#allocation6], 256  }
  0x26   :  { %483 = vsyncadd [#allocation6], 4294967040  ;;  %vm84_vm0 = vcmask 130048   ;;  %v75_v0 = vld [vmem:[#allocation5] sm:$0xff]  ;;  %v76_v1 = vld [vmem:[#allocation5 + $0x8] sm:$0xff]  ;;  %vm178_vm1 = vcmask 257024  }
  0x27   :  { %v73_v2 = vld [vmem:[#allocation2] sm:$0xff]  ;;  %v390_v3 = vpack.c.bf16 %v76_v1, %v75_v0  ;;  %v74_v4 = vld [vmem:[#allocation2 + $0x8] sm:$0xff]  ;;  %vm183_vm2 = vcmask 261120   ;;  %vm287_vm3 = vcmask 31744   ;;  %v490_v25 = vmov 0.0   ;;  %s491_s29 = smov [#allocation7]  }
  0x28   :  { %382 = vmatprep.mubr.msk.f32.mxu0 %vm84_vm0, %v73_v2  ;;  %v365_v5 = vld [vmem:[%s602_s2] ss:$0 sm:$0xff]  ;;  %304 = vst.msk [vmem:[%s606_s6] sm:$0xff] %vm287_vm3, %v490_v25  ;;  %s328_s30 = sshll.u32 %s491_s29, 4  ;;  %s329_s30 = int_to_ptr.vmem [resolvable:$true] %s328_s30 }
  0x29   :  { %391 = vmatprep.subr.bf16.mxu0 %v390_v3  ;;  %v196_v16 = vld [vmem:[%s603_s3] sm:$0xf]  ;;  %s458_s7 = scalar_lea.vmem %s329_s30, 128  ;;  %p463_p3 = scmp.lt.s32.totalorder %s329_s30, %s329_s30 }
  0x2a   :  { %393 = vmatpush3.bf16.msra.mxu0 %v390_v3  ;;  %385 = vmatprep.subr.msk.mxu1 %vm183_vm2, %v196_v16  ;;  %p459_p2 = scmp.ne.s32.totalorder %s329_s30, %s458_s7  ;;  %p464_p4 = scmp.lt.s32.totalorder %s458_s7, %s458_s7 }
  0x2b   :  { %386 = vmatpush3.xpose.msk.msra.mxu1 %vm183_vm2, %v196_v16 }
  0x2c   :  { %p465_p5 = por %p464_p4, %p463_p3 }
  0x2d   :  { %383 = vmatmul.mubr.msk.f32.vlgmr.msra.gmra.mrb[0].mxu0 %vm84_vm0, %v74_v4 }
  0x2e   :  { %p466_p6 = pnand %p465_p5, %p459_p2 }
  0x2f   :  { %v305_v31 = vld [vmem:[%s606_s6] sm:$0xff] }
 0x100   :  { %v384_v6 = vpop.f32.mrb[0].mxu0 }
 0x101   :  { %v163_v7 = vadd.f32 %v384_v6, %v365_v5  ;;  %v157_v8 = vpop.f32.mrb[1].mxu0 }
 0x102   :  { %v158_v9 = vadd.f32 %v365_v5, %v157_v8 }
 0x103   :  { %v177_v10 = vpack.c.bf16 %v163_v7, %v163_v7  ;;  %v182_v14 = vmul.f32 %v163_v7, %v163_v7 }
 0x104   :  { %v176_v11 = vpack.c.bf16 %v158_v9, %v158_v9  ;;  %v181_v12 = vmul.f32 %v158_v9, %v158_v9 }
 0x105   :  { %180 = vst.msk [vmem:[#allocation7 + $0x4] sm:$0xf] %vm178_vm1, %v177_v10  ;;  %v187_v15 = vsel %vm183_vm2, %v182_v14, 0.0 }
 0x106   :  { %v184_v13 = vsel %vm183_vm2, %v181_v12, 0.0  ;;  %179 = vst.msk [vmem:[#allocation7] sm:$0xf] %vm178_vm1, %v176_v11 }
 0x107   :  { %185 = vadd.xlane.f32.xlu0 %v184_v13 }
 0x10b   :  { %188 = vadd.xlane.f32.xlu0 %v187_v15 }
 0x194   :  { %v186_v17 = vpop.xlane.xlu0 %185 }
 0x195   :  { %v190_v18 = vmax.f32 %v186_v17, 1e-24 }
 0x197   :  { %402 = vrsqrt.f32 %v190_v18 }
 0x198   :  { %v189_v19 = vpop.xlane.xlu0 %188 }
 0x199   :  { %v191_v20 = vmax.f32 %v189_v19, 1e-24 }
 0x19b   :  { %404 = vrsqrt.f32 %v191_v20 }
 0x1a1   :  { %v403_v21 = vpop.eup %402 }
 0x1a2   :  { %v194_v22 = vmul.f32 %v403_v21, %v158_v9 }
 0x1a4   :  { %387 = vmatprep.mubr.msk.f32.mxu1 %vm183_vm2, %v194_v22 }
 0x1a5   :  { %v405_v23 = vpop.eup %404 }
 0x1a6   :  { %v195_v24 = vmul.f32 %v405_v23, %v163_v7 }
 0x1a8   :  { %388 = vmatmul.mubr.msk.f32.vlgmr.msra.gmra.mrb[0].mxu1 %vm183_vm2, %v195_v24 }
 0x27b   :  { %v389_v26 = vpop.f32.mrb[0].mxu1 }
 0x27c   :  { %v282_v27 = vmul.f32 20.0, %v389_v26  ;;  %v309_v28 = vsel %vm287_vm3, %v389_v26, 0.0  ;;  %v272_v29 = vpop.f32.mrb[1].mxu1 }
 0x27d   :  { %v281_v30 = vmul.f32 20.0, %v272_v29  ;;  %v308_v32 = vsel %vm287_vm3, %v272_v29, 0.0 }
 0x27e   :  { %v310_v33 = vadd.f32 %v309_v28, %v308_v32  ;;  %v285_v34 = vmul.f32 1.442695, %v282_v27 }
 0x27f   :  { %v283_v35 = vmul.f32 1.442695, %v281_v30 }
 0x280   :  { %v311_v36 = vadd.f32 %v310_v33, %v305_v31 }
 0x281   :  { %406 = vpow2.f32 %v283_v35 }
 0x282   :  { %312 = vst.msk [vmem:[%s606_s6] sm:$0xff] %vm287_vm3, %v311_v36  ;;  %408 = vpow2.f32 %v285_v34 }
 0x28b   :  { %v407_v37 = vpop.eup %406 }
 0x28c   :  { %v288_v38 = vsel %vm287_vm3, %v407_v37, 0.0  ;;  %v409_v39 = vpop.eup %408 }
 0x28d   :  { %289 = vadd.xlane.f32.xlu1 %v288_v38  ;;  %v291_v40 = vsel %vm287_vm3, %v409_v39, 0.0 }
 0x291   :  { %292 = vadd.xlane.f32.xlu1 %v291_v40 }
 0x292   :  { %469 = shalt.err (!%p466_p6)
}
 0x293   :  { %s470_s9 = scalar_lea.hbm %s604_s4, 128 }
 0x294   :  { %p471_p7 = scmp.ne.s32.totalorder %s604_s4, %s470_s9  ;;  %p474_p8 = scmp.lt.u32.totalorder %s470_s9, %s604_s4 }
 0x296   :  { %p476_p9 = pnand %p474_p8, %p471_p7 }
 0x298   :  { %479 = shalt.err (!%p476_p9)
}
 0x299   :  { %s492_s14 = smov 64   ;;  %s493_s15 = smov 4  }
 0x29a   :  { %334 = dma.vmem_to_hbm [thread:$0]  %s329_s30, 128, %s604_s4, [#allocation4], %s492_s14, %s492_s14, %s493_s15  }
 0x31a   :  { %v290_v41 = vpop.xlane.xlu1 %289 }
 0x31b   :  { %410 = vrcp.f32 %v290_v41 }
 0x31e   :  { %v293_v42 = vpop.xlane.xlu1 %292 }
 0x31f   :  { %412 = vrcp.f32 %v293_v42 }
 0x325   :  { %v411_v43 = vpop.eup %410 }
 0x326   :  { %v295_v44 = vmul.f32 %v411_v43, %v407_v37 }
 0x328   :  { %298 = vst.msk [vmem:[%s605_s5] sm:$0xff] %vm287_vm3, %v295_v44 }
 0x329   :  { %v413_v45 = vpop.eup %412 }
 0x32a   :  { %v297_v46 = vmul.f32 %v413_v45, %v409_v39 }
 0x32c   :  { %299 = vst.msk [vmem:[%s605_s5 + $0x8] sm:$0xff] %vm287_vm3, %v297_v46 }
 0x32d   :  { %484 = dma.done.wait [#allocation4], 128  }
 0x32e   :  { %485 = vsyncadd [#allocation4], 4294967168 }
 0x32f   :  { %354 = vsyncpa [#allocation3], 1 }
 0x330   :  { %355 = vsyncpa [#allocation6], 1 }
 0x331   :  { %356 = vsyncpa [#allocation4], 1 }

</bundles_post_ra>
